<compile_context>
chip_gen: v7x
topology: tpu7x:2x2x1
jax: 0.10.0
libtpu: 0.0.40
codegen_flags: <defaults>
</compile_context>

<pallas_src>
import functools

import jax
import jax.numpy as jnp
from jax.experimental import pallas as pl
from jax.experimental.pallas import tpu as pltpu


def _ssd_loss_kernel(xo_ref, xi_ref, w_ref, b_ref, *out_refs,
                     acc_ch, emit_dets):
    """One (batch, spatial-tile) grid step.

    xo_ref / xi_ref : (C, T)        reconstructed / ground-truth pixels,
                                    spatial (H*W) tile on the lane axis
    w_ref           : (C, DOUT, 1)  0.5 * 1x1-conv detection-head weights
    b_ref           : (DOUT, 1)     0.5 * detection-head bias
    [det_o, det_i]  : (DOUT, T)     optional detection maps (post-sigmoid)
    loss_ref        : (8, 128)      per-(batch, tile) partial sum of |diff|
    acc_ref         : (1, 128)      per-(batch, tile) agreement counts on
                                    detection channel `acc_ch`
    """
    if emit_dets:
        det_o_ref, det_i_ref, loss_ref, acc_ref = out_refs
    else:
        loss_ref, acc_ref = out_refs
        det_o_ref = det_i_ref = None

    cdim, t = xo_ref.shape
    dout = b_ref.shape[0]

    bias = b_ref[...]                              # (DOUT, 1)
    w_cols = [w_ref[c] for c in range(cdim)]       # each (DOUT, 1)

    def head(x):
        # x: (C, T).  Tiny C=4 contraction as unrolled VPU FMAs; broadcasts
        # stay implicit (sublane bcast of x rows, lane bcast of w columns) -
        # no explicit jnp.broadcast_to temporaries.
        z = w_cols[0] * x[0:1, :]
        for c in range(1, cdim):
            z = z + w_cols[c] * x[c:c + 1, :]
        z = z + bias                               # lane-broadcast bias add
        # sigmoid(w.x + b): the 0.5 argument scale is pre-folded into w, b,
        # so only a single EUP tanh + cheap affine remains.
        return 0.5 * (jnp.tanh(z) + 1.0)

    det_o = head(xo_ref[...])
    det_i = head(xi_ref[...])

    if emit_dets:
        det_o_ref[...] = det_o.astype(det_o_ref.dtype)
        det_i_ref[...] = det_i.astype(det_i_ref.dtype)

    # Loss partial: |det_o - det_i| folded straight into an (8, 128)
    # vreg-shaped accumulator from aligned slices (no (DOUT, T) / (8, T)
    # intermediates hitting the vector-store slot).
    v = jnp.zeros((8, 128), jnp.float32)
    for r in range(0, dout, 8):
        for c0 in range(0, t, 128):
            v = v + jnp.abs(det_o[r:r + 8, c0:c0 + 128]
                            - det_i[r:r + 8, c0:c0 + 128])
    loss_ref[...] = v

    # Accuracy-proxy partial: threshold agreement on one detection channel,
    # computed on data already in vregs (avoids a separate XLA pass over the
    # detection maps in HBM).
    oo = (det_o[acc_ch:acc_ch + 1, :] > 0.25).astype(jnp.float32)   # (1, T)
    oi = (det_i[acc_ch:acc_ch + 1, :] > 0.25).astype(jnp.float32)
    agree = 1.0 - jnp.abs(oo - oi)
    a = agree[:, 0:128]
    for c0 in range(128, t, 128):
        a = a + agree[:, c0:c0 + 128]
    acc_ref[...] = a


def ssd_loss(outputs, imgs, w, b, *, max_tile=8192, return_detections=False,
             det_dtype=jnp.bfloat16):
    """Pallas implementation of SSDLoss.forward (synthetic detection head).

    outputs, imgs : (B, C, H, W) float32 (NCHW, PyTorch convention)
    w             : (C, DOUT) synthetic detection-head weight
    b             : (DOUT,)   synthetic detection-head bias
    Returns (loss, accuracy) by default; with return_detections=True also
    returns the two detection maps in lane-dense (B, DOUT, H*W) layout.
    """
    # normalize_outputs: resize reconstructed frames to the image resolution.
    # TODO(synk): torchvision Resize(antialias=True) bilinear may differ
    # slightly from jax.image.resize's antialiased 'linear' filter.
    if outputs.shape[2:] != imgs.shape[2:]:
        outputs = jax.image.resize(outputs, imgs.shape, method="linear",
                                   antialias=True)

    B, C, H, W = imgs.shape
    HW = H * W
    DOUT = w.shape[1]
    # TODO(synk): detection channel count must stay a multiple of 8 (it is a
    # synthetic head parameter chosen as such).
    assert DOUT % 8 == 0, "detection channels must be a multiple of 8"
    acc_ch = min(4, DOUT - 1)

    # Spatial tiling: largest 128-multiple tile <= max_tile; H*W is padded up
    # to a tile multiple with zeros (padded pixels are corrected for below).
    max_tile = max(128, (max_tile // 128) * 128)
    hw_aligned = ((HW + 127) // 128) * 128
    tile = min(max_tile, hw_aligned)
    n_tiles = -(-hw_aligned // tile)
    hw_pad = n_tiles * tile
    pad = hw_pad - HW

    # NCHW -> (B, C, H*W): free reshape; the spatial axis stays lane-dense.
    xo = outputs.reshape(B, C, HW)
    xi = imgs.reshape(B, C, HW)
    if pad:
        xo = jnp.pad(xo, ((0, 0), (0, 0), (0, pad)))
        xi = jnp.pad(xi, ((0, 0), (0, 0), (0, pad)))

    # Fold the sigmoid's 0.5 argument scale into the head parameters.
    w3 = (0.5 * w).astype(jnp.float32).reshape(C, DOUT, 1)
    b2 = (0.5 * b).astype(jnp.float32).reshape(DOUT, 1)

    grid = (B, n_tiles)

    out_shapes, out_specs = [], []
    if return_detections:
        det_shape = jax.ShapeDtypeStruct((B, DOUT, hw_pad), det_dtype)
        det_spec = pl.BlockSpec((None, DOUT, tile), lambda i, j: (i, 0, j))
        out_shapes += [det_shape, det_shape]
        out_specs += [det_spec, det_spec]
    out_shapes += [jax.ShapeDtypeStruct((B, n_tiles, 8, 128), jnp.float32),
                   jax.ShapeDtypeStruct((B, n_tiles, 1, 128), jnp.float32)]
    out_specs += [pl.BlockSpec((None, None, 8, 128), lambda i, j: (i, j, 0, 0)),
                  pl.BlockSpec((None, None, 1, 128), lambda i, j: (i, j, 0, 0))]

    kernel = functools.partial(_ssd_loss_kernel, acc_ch=acc_ch,
                               emit_dets=return_detections)

    outs = pl.pallas_call(
        kernel,
        out_shape=tuple(out_shapes),
        grid_spec=pltpu.PrefetchScalarGridSpec(
            num_scalar_prefetch=0,
            grid=grid,
            in_specs=[
                pl.BlockSpec((None, C, tile), lambda i, j: (i, 0, j)),
                pl.BlockSpec((None, C, tile), lambda i, j: (i, 0, j)),
                pl.BlockSpec((C, DOUT, 1), lambda i, j: (0, 0, 0)),
                pl.BlockSpec((DOUT, 1), lambda i, j: (0, 0)),
            ],
            out_specs=out_specs,
        ),
        compiler_params=pltpu.CompilerParams(
            # Per-(batch, tile) partials carry no cross-step state, so both
            # grid axes can be sharded across TensorCores (helps small B on
            # multi-TC parts; no-op on single-TC v5e/v6e).
            dimension_semantics=("parallel", "parallel"),
            vmem_limit_bytes=32 * 1024 * 1024),
    )(xo, xi, w3, b2)

    if return_detections:
        det_o, det_i, part_loss, part_acc = outs
        det_o = det_o[:, :, :HW]
        det_i = det_i[:, :, :HW]
    else:
        part_loss, part_acc = outs
        det_o = det_i = None

    # Finalize.  Padded pixels contribute exactly 0 to |diff| (both chunks are
    # zero there, hence identical detections) and exactly 1 each to the
    # agreement count, so only the agreement total needs a correction.
    loss = jnp.sum(part_loss) / jnp.float32(B * HW * DOUT)
    agree = jnp.sum(part_acc) - jnp.float32(B * pad)
    # TODO(synk): non_max_suppression + f1_score are data-dependent host-style
    # algorithms with no clean Pallas equivalent; a single-channel score
    # agreement proxy replaces the true detection F1.
    accuracy = agree / jnp.float32(B * HW)

    if return_detections:
        return loss, accuracy, det_o, det_i
    return loss, accuracy


if __name__ == "__main__":
    key = jax.random.PRNGKey(0)
    k1, k2, k3, k4 = jax.random.split(key, 4)

    # Small, module-consistent shapes: batch=2, channels=4 (image-like), 16x16.
    B, C, H, W = 2, 4, 16, 16
    NC = 3                 # synthetic number of classes
    A = 3                  # anchors per location
    DOUT = A * (5 + NC)    # 24 detection channels

    imgs = jax.random.uniform(k1, (B, C, H, W), dtype=jnp.float32)
    # Reconstructed outputs: noisy version of imgs (exercises the loss path).
    outputs = imgs + 0.1 * jax.random.normal(k2, (B, C, H, W), dtype=jnp.float32)

    # Deterministic synthetic detection-head parameters.
    w = 0.1 * jax.random.normal(k3, (C, DOUT), dtype=jnp.float32)
    b = 0.01 * jax.random.normal(k4, (DOUT,), dtype=jnp.float32)

    # Pure-JAX reference (same lane-dense (B, DOUT, H*W) layout).
    xo_f = outputs.reshape(B, C, H * W)
    xi_f = imgs.reshape(B, C, H * W)
    ref_o = jax.nn.sigmoid(jnp.einsum("cd,bct->bdt", w, xo_f) + b[None, :, None])
    ref_i = jax.nn.sigmoid(jnp.einsum("cd,bct->bdt", w, xi_f) + b[None, :, None])
    ref_loss = jnp.abs(ref_o - ref_i).mean()
    ref_acc = jnp.mean(((ref_o[:, 4, :] > 0.25) == (ref_i[:, 4, :] > 0.25))
                       .astype(jnp.float32))

    # 1) Default fast path: loss + accuracy only, no detection maps in HBM.
    loss, acc = ssd_loss(outputs, imgs, w, b)
    jax.block_until_ready((loss, acc))
    assert jnp.allclose(loss, ref_loss, atol=1e-5), (loss, ref_loss)
    assert jnp.allclose(acc, ref_acc, atol=1e-2), (acc, ref_acc)

    # 2) Optional detection-map path (bfloat16, lane-dense outputs).
    loss2, acc2, det_o, det_i = ssd_loss(outputs, imgs, w, b,
                                         return_detections=True)
    jax.block_until_ready((loss2, acc2, det_o, det_i))
    assert jnp.allclose(loss2, ref_loss, atol=1e-5), (loss2, ref_loss)
    assert det_o.shape == (B, DOUT, H * W) and det_o.dtype == jnp.bfloat16
    assert jnp.allclose(det_o.astype(jnp.float32), ref_o, atol=2e-2)
    assert jnp.allclose(det_i.astype(jnp.float32), ref_i, atol=2e-2)
    assert bool(jnp.isfinite(acc2))

    # 3) Ragged spatial size (H*W not a multiple of 128) exercises padding.
    H3, W3 = 6, 10
    imgs3 = jax.random.uniform(k1, (B, C, H3, W3), dtype=jnp.float32)
    outs3 = imgs3 + 0.1 * jax.random.normal(k2, (B, C, H3, W3),
                                            dtype=jnp.float32)
    loss3, acc3 = ssd_loss(outs3, imgs3, w, b)
    jax.block_until_ready((loss3, acc3))
    r3o = jax.nn.sigmoid(jnp.einsum("cd,bct->bdt", w, outs3.reshape(B, C, -1))
                         + b[None, :, None])
    r3i = jax.nn.sigmoid(jnp.einsum("cd,bct->bdt", w, imgs3.reshape(B, C, -1))
                         + b[None, :, None])
    assert jnp.allclose(loss3, jnp.abs(r3o - r3i).mean(), atol=1e-5)
    assert bool(jnp.isfinite(acc3))

    print("KERNEL_OK")
</pallas_src>

<mosaic_0001>
module attributes {stable_mosaic.version = 11 : i64} {
  func.func @_ssd_loss_kernel(%arg0: i32, %arg1: i32, %arg2: memref<1x4x256xf32, #tpu.memory_space<vmem>>, %arg3: memref<1x4x256xf32, #tpu.memory_space<vmem>>, %arg4: memref<4x24x1xf32, #tpu.memory_space<vmem>>, %arg5: memref<24x1xf32, #tpu.memory_space<vmem>>, %arg6: memref<1x1x8x128xf32, #tpu.memory_space<vmem>>, %arg7: memref<1x1x1x128xf32, #tpu.memory_space<vmem>>) attributes {dimension_semantics = [#tpu.dimension_semantics<parallel>, #tpu.dimension_semantics<parallel>], iteration_bounds = array<i64: 2, 1>, scalar_prefetch = 0 : i64, scratch_operands = 0 : i64, tpu.core_type = #tpu.core_type<tc>, window_params = [{transform_indices = @transform_0, window_bounds = array<i64: 1, 4, 256>}, {transform_indices = @transform_1, window_bounds = array<i64: 1, 4, 256>}, {pipeline_mode = #tpu.pipeline_mode<synchronous>, transform_indices = @transform_2, window_bounds = array<i64: 4, 24, 1>}, {pipeline_mode = #tpu.pipeline_mode<synchronous>, transform_indices = @transform_3, window_bounds = array<i64: 24, 1>}, {transform_indices = @transform_4, window_bounds = array<i64: 1, 1, 8, 128>}, {transform_indices = @transform_5, window_bounds = array<i64: 1, 1, 1, 128>}]} {
    %c0 = arith.constant 0 : index
    %c0_0 = arith.constant 0 : index
    %0 = vector.load %arg5[%c0, %c0_0] : memref<24x1xf32, #tpu.memory_space<vmem>>, vector<24x1xf32>
    %c0_1 = arith.constant 0 : index
    %c0_2 = arith.constant 0 : index
    %c0_3 = arith.constant 0 : index
    %1 = vector.load %arg4[%c0_1, %c0_2, %c0_3] : memref<4x24x1xf32, #tpu.memory_space<vmem>>, vector<1x24x1xf32>
    %2 = vector.shape_cast %1 : vector<1x24x1xf32> to vector<24x1xf32>
    %c1 = arith.constant 1 : index
    %c0_4 = arith.constant 0 : index
    %c0_5 = arith.constant 0 : index
    %3 = vector.load %arg4[%c1, %c0_4, %c0_5] : memref<4x24x1xf32, #tpu.memory_space<vmem>>, vector<1x24x1xf32>
    %4 = vector.shape_cast %3 : vector<1x24x1xf32> to vector<24x1xf32>
    %c2 = arith.constant 2 : index
    %c0_6 = arith.constant 0 : index
    %c0_7 = arith.constant 0 : index
    %5 = vector.load %arg4[%c2, %c0_6, %c0_7] : memref<4x24x1xf32, #tpu.memory_space<vmem>>, vector<1x24x1xf32>
    %6 = vector.shape_cast %5 : vector<1x24x1xf32> to vector<24x1xf32>
    %c3 = arith.constant 3 : index
    %c0_8 = arith.constant 0 : index
    %c0_9 = arith.constant 0 : index
    %7 = vector.load %arg4[%c3, %c0_8, %c0_9] : memref<4x24x1xf32, #tpu.memory_space<vmem>>, vector<1x24x1xf32>
    %8 = vector.shape_cast %7 : vector<1x24x1xf32> to vector<24x1xf32>
    %c0_10 = arith.constant 0 : index
    %c0_11 = arith.constant 0 : index
    %c0_12 = arith.constant 0 : index
    %9 = vector.load %arg2[%c0_10, %c0_11, %c0_12] : memref<1x4x256xf32, #tpu.memory_space<vmem>>, vector<1x4x256xf32>
    %10 = vector.shape_cast %9 : vector<1x4x256xf32> to vector<4x256xf32>
    %11 = vector.extract_strided_slice %10 {offsets = [0, 0], sizes = [1, 256], strides = [1, 1]} : vector<4x256xf32> to vector<1x256xf32>
    %12 = vector.broadcast %2 : vector<24x1xf32> to vector<24x256xf32>
    %13 = vector.broadcast %11 : vector<1x256xf32> to vector<24x256xf32>
    %14 = arith.mulf %12, %13 : vector<24x256xf32>
    %15 = vector.extract_strided_slice %10 {offsets = [1, 0], sizes = [1, 256], strides = [1, 1]} : vector<4x256xf32> to vector<1x256xf32>
    %16 = vector.broadcast %4 : vector<24x1xf32> to vector<24x256xf32>
    %17 = vector.broadcast %15 : vector<1x256xf32> to vector<24x256xf32>
    %18 = arith.mulf %16, %17 : vector<24x256xf32>
    %19 = arith.addf %14, %18 : vector<24x256xf32>
    %20 = vector.extract_strided_slice %10 {offsets = [2, 0], sizes = [1, 256], strides = [1, 1]} : vector<4x256xf32> to vector<1x256xf32>
    %21 = vector.broadcast %6 : vector<24x1xf32> to vector<24x256xf32>
    %22 = vector.broadcast %20 : vector<1x256xf32> to vector<24x256xf32>
    %23 = arith.mulf %21, %22 : vector<24x256xf32>
    %24 = arith.addf %19, %23 : vector<24x256xf32>
    %25 = vector.extract_strided_slice %10 {offsets = [3, 0], sizes = [1, 256], strides = [1, 1]} : vector<4x256xf32> to vector<1x256xf32>
    %26 = vector.broadcast %8 : vector<24x1xf32> to vector<24x256xf32>
    %27 = vector.broadcast %25 : vector<1x256xf32> to vector<24x256xf32>
    %28 = arith.mulf %26, %27 : vector<24x256xf32>
    %29 = arith.addf %24, %28 : vector<24x256xf32>
    %30 = vector.broadcast %0 : vector<24x1xf32> to vector<24x256xf32>
    %31 = arith.addf %29, %30 : vector<24x256xf32>
    %32 = math.tanh %31 : vector<24x256xf32>
    %cst = arith.constant 1.000000e+00 : f32
    %33 = vector.broadcast %cst : f32 to vector<24x256xf32>
    %34 = arith.addf %32, %33 : vector<24x256xf32>
    %cst_13 = arith.constant 5.000000e-01 : f32
    %35 = vector.broadcast %cst_13 : f32 to vector<24x256xf32>
    %36 = arith.mulf %35, %34 : vector<24x256xf32>
    %c0_14 = arith.constant 0 : index
    %c0_15 = arith.constant 0 : index
    %c0_16 = arith.constant 0 : index
    %37 = vector.load %arg3[%c0_14, %c0_15, %c0_16] : memref<1x4x256xf32, #tpu.memory_space<vmem>>, vector<1x4x256xf32>
    %38 = vector.shape_cast %37 : vector<1x4x256xf32> to vector<4x256xf32>
    %39 = vector.extract_strided_slice %38 {offsets = [0, 0], sizes = [1, 256], strides = [1, 1]} : vector<4x256xf32> to vector<1x256xf32>
    %40 = vector.broadcast %2 : vector<24x1xf32> to vector<24x256xf32>
    %41 = vector.broadcast %39 : vector<1x256xf32> to vector<24x256xf32>
    %42 = arith.mulf %40, %41 : vector<24x256xf32>
    %43 = vector.extract_strided_slice %38 {offsets = [1, 0], sizes = [1, 256], strides = [1, 1]} : vector<4x256xf32> to vector<1x256xf32>
    %44 = vector.broadcast %4 : vector<24x1xf32> to vector<24x256xf32>
    %45 = vector.broadcast %43 : vector<1x256xf32> to vector<24x256xf32>
    %46 = arith.mulf %44, %45 : vector<24x256xf32>
    %47 = arith.addf %42, %46 : vector<24x256xf32>
    %48 = vector.extract_strided_slice %38 {offsets = [2, 0], sizes = [1, 256], strides = [1, 1]} : vector<4x256xf32> to vector<1x256xf32>
    %49 = vector.broadcast %6 : vector<24x1xf32> to vector<24x256xf32>
    %50 = vector.broadcast %48 : vector<1x256xf32> to vector<24x256xf32>
    %51 = arith.mulf %49, %50 : vector<24x256xf32>
    %52 = arith.addf %47, %51 : vector<24x256xf32>
    %53 = vector.extract_strided_slice %38 {offsets = [3, 0], sizes = [1, 256], strides = [1, 1]} : vector<4x256xf32> to vector<1x256xf32>
    %54 = vector.broadcast %8 : vector<24x1xf32> to vector<24x256xf32>
    %55 = vector.broadcast %53 : vector<1x256xf32> to vector<24x256xf32>
    %56 = arith.mulf %54, %55 : vector<24x256xf32>
    %57 = arith.addf %52, %56 : vector<24x256xf32>
    %58 = vector.broadcast %0 : vector<24x1xf32> to vector<24x256xf32>
    %59 = arith.addf %57, %58 : vector<24x256xf32>
    %60 = math.tanh %59 : vector<24x256xf32>
    %cst_17 = arith.constant 1.000000e+00 : f32
    %61 = vector.broadcast %cst_17 : f32 to vector<24x256xf32>
    %62 = arith.addf %60, %61 : vector<24x256xf32>
    %cst_18 = arith.constant 5.000000e-01 : f32
    %63 = vector.broadcast %cst_18 : f32 to vector<24x256xf32>
    %64 = arith.mulf %63, %62 : vector<24x256xf32>
    %cst_19 = arith.constant 0.000000e+00 : f32
    %65 = vector.broadcast %cst_19 : f32 to vector<8x128xf32>
    %66 = vector.extract_strided_slice %36 {offsets = [0, 0], sizes = [8, 128], strides = [1, 1]} : vector<24x256xf32> to vector<8x128xf32>
    %67 = vector.extract_strided_slice %64 {offsets = [0, 0], sizes = [8, 128], strides = [1, 1]} : vector<24x256xf32> to vector<8x128xf32>
    %68 = arith.subf %66, %67 : vector<8x128xf32>
    %69 = math.absf %68 : vector<8x128xf32>
    %70 = arith.addf %65, %69 : vector<8x128xf32>
    %71 = vector.extract_strided_slice %36 {offsets = [0, 128], sizes = [8, 128], strides = [1, 1]} : vector<24x256xf32> to vector<8x128xf32>
    %72 = vector.extract_strided_slice %64 {offsets = [0, 128], sizes = [8, 128], strides = [1, 1]} : vector<24x256xf32> to vector<8x128xf32>
    %73 = arith.subf %71, %72 : vector<8x128xf32>
    %74 = math.absf %73 : vector<8x128xf32>
    %75 = arith.addf %70, %74 : vector<8x128xf32>
    %76 = vector.extract_strided_slice %36 {offsets = [8, 0], sizes = [8, 128], strides = [1, 1]} : vector<24x256xf32> to vector<8x128xf32>
    %77 = vector.extract_strided_slice %64 {offsets = [8, 0], sizes = [8, 128], strides = [1, 1]} : vector<24x256xf32> to vector<8x128xf32>
    %78 = arith.subf %76, %77 : vector<8x128xf32>
    %79 = math.absf %78 : vector<8x128xf32>
    %80 = arith.addf %75, %79 : vector<8x128xf32>
    %81 = vector.extract_strided_slice %36 {offsets = [8, 128], sizes = [8, 128], strides = [1, 1]} : vector<24x256xf32> to vector<8x128xf32>
    %82 = vector.extract_strided_slice %64 {offsets = [8, 128], sizes = [8, 128], strides = [1, 1]} : vector<24x256xf32> to vector<8x128xf32>
    %83 = arith.subf %81, %82 : vector<8x128xf32>
    %84 = math.absf %83 : vector<8x128xf32>
    %85 = arith.addf %80, %84 : vector<8x128xf32>
    %86 = vector.extract_strided_slice %36 {offsets = [16, 0], sizes = [8, 128], strides = [1, 1]} : vector<24x256xf32> to vector<8x128xf32>
    %87 = vector.extract_strided_slice %64 {offsets = [16, 0], sizes = [8, 128], strides = [1, 1]} : vector<24x256xf32> to vector<8x128xf32>
    %88 = arith.subf %86, %87 : vector<8x128xf32>
    %89 = math.absf %88 : vector<8x128xf32>
    %90 = arith.addf %85, %89 : vector<8x128xf32>
    %91 = vector.extract_strided_slice %36 {offsets = [16, 128], sizes = [8, 128], strides = [1, 1]} : vector<24x256xf32> to vector<8x128xf32>
    %92 = vector.extract_strided_slice %64 {offsets = [16, 128], sizes = [8, 128], strides = [1, 1]} : vector<24x256xf32> to vector<8x128xf32>
    %93 = arith.subf %91, %92 : vector<8x128xf32>
    %94 = math.absf %93 : vector<8x128xf32>
    %95 = arith.addf %90, %94 : vector<8x128xf32>
    %c0_20 = arith.constant 0 : index
    %c0_21 = arith.constant 0 : index
    %c0_22 = arith.constant 0 : index
    %c0_23 = arith.constant 0 : index
    %96 = vector.load %arg6[%c0_20, %c0_21, %c0_22, %c0_23] : memref<1x1x8x128xf32, #tpu.memory_space<vmem>>, vector<1x1x8x128xf32>
    %97 = vector.shape_cast %96 : vector<1x1x8x128xf32> to vector<8x128xf32>
    %98 = vector.shape_cast %95 : vector<8x128xf32> to vector<1x1x8x128xf32>
    tpu.vector_store %arg6[%c0_20, %c0_21, %c0_22, %c0_23], %98 {strides = array<i32>} : memref<1x1x8x128xf32, #tpu.memory_space<vmem>>, vector<1x1x8x128xf32>,
    %99 = vector.extract_strided_slice %36 {offsets = [4, 0], sizes = [1, 256], strides = [1, 1]} : vector<24x256xf32> to vector<1x256xf32>
    %cst_24 = arith.constant 2.500000e-01 : f32
    %100 = vector.broadcast %cst_24 : f32 to vector<1x256xf32>
    %101 = arith.cmpf ogt, %99, %100 : vector<1x256xf32>
    %102 = arith.extui %101 : vector<1x256xi1> to vector<1x256xi32>
    %103 = arith.sitofp %102 : vector<1x256xi32> to vector<1x256xf32>
    %104 = vector.extract_strided_slice %64 {offsets = [4, 0], sizes = [1, 256], strides = [1, 1]} : vector<24x256xf32> to vector<1x256xf32>
    %cst_25 = arith.constant 2.500000e-01 : f32
    %105 = vector.broadcast %cst_25 : f32 to vector<1x256xf32>
    %106 = arith.cmpf ogt, %104, %105 : vector<1x256xf32>
    %107 = arith.extui %106 : vector<1x256xi1> to vector<1x256xi32>
    %108 = arith.sitofp %107 : vector<1x256xi32> to vector<1x256xf32>
    %109 = arith.subf %103, %108 : vector<1x256xf32>
    %110 = math.absf %109 : vector<1x256xf32>
    %cst_26 = arith.constant 1.000000e+00 : f32
    %111 = vector.broadcast %cst_26 : f32 to vector<1x256xf32>
    %112 = arith.subf %111, %110 : vector<1x256xf32>
    %113 = vector.extract_strided_slice %112 {offsets = [0, 0], sizes = [1, 128], strides = [1, 1]} : vector<1x256xf32> to vector<1x128xf32>
    %114 = vector.extract_strided_slice %112 {offsets = [0, 128], sizes = [1, 128], strides = [1, 1]} : vector<1x256xf32> to vector<1x128xf32>
    %115 = arith.addf %113, %114 : vector<1x128xf32>
    %c0_27 = arith.constant 0 : index
    %c0_28 = arith.constant 0 : index
    %c0_29 = arith.constant 0 : index
    %c0_30 = arith.constant 0 : index
    %116 = vector.load %arg7[%c0_27, %c0_28, %c0_29, %c0_30] : memref<1x1x1x128xf32, #tpu.memory_space<vmem>>, vector<1x1x1x128xf32>
    %117 = vector.shape_cast %116 : vector<1x1x1x128xf32> to vector<1x128xf32>
    %118 = vector.shape_cast %115 : vector<1x128xf32> to vector<1x1x1x128xf32>
    tpu.vector_store %arg7[%c0_27, %c0_28, %c0_29, %c0_30], %118 {strides = array<i32>} : memref<1x1x1x128xf32, #tpu.memory_space<vmem>>, vector<1x1x1x128xf32>,
    return
  }
  func.func @transform_0(%arg0: i32, %arg1: i32) -> (i32, i32, i32) {
    %c0_i32 = arith.constant 0 : i32
    %c0_i32_0 = arith.constant 0 : i32
    return %arg0, %c0_i32, %arg1 : i32, i32, i32
  }
  func.func @transform_1(%arg0: i32, %arg1: i32) -> (i32, i32, i32) {
    %c0_i32 = arith.constant 0 : i32
    %c0_i32_0 = arith.constant 0 : i32
    return %arg0, %c0_i32, %arg1 : i32, i32, i32
  }
  func.func @transform_2(%arg0: i32, %arg1: i32) -> (i32, i32, i32) {
    %c0_i32 = arith.constant 0 : i32
    %c0_i32_0 = arith.constant 0 : i32
    %c0_i32_1 = arith.constant 0 : i32
    %c0_i32_2 = arith.constant 0 : i32
    return %c0_i32, %c0_i32_0, %c0_i32_1 : i32, i32, i32
  }
  func.func @transform_3(%arg0: i32, %arg1: i32) -> (i32, i32) {
    %c0_i32 = arith.constant 0 : i32
    %c0_i32_0 = arith.constant 0 : i32
    %c0_i32_1 = arith.constant 0 : i32
    return %c0_i32, %c0_i32_0 : i32, i32
  }
  func.func @transform_4(%arg0: i32, %arg1: i32) -> (i32, i32, i32, i32) {
    %c0_i32 = arith.constant 0 : i32
    %c0_i32_0 = arith.constant 0 : i32
    %c0_i32_1 = arith.constant 0 : i32
    return %arg0, %arg1, %c0_i32, %c0_i32_0 : i32, i32, i32, i32
  }
  func.func @transform_5(%arg0: i32, %arg1: i32) -> (i32, i32, i32, i32) {
    %c0_i32 = arith.constant 0 : i32
    %c0_i32_0 = arith.constant 0 : i32
    %c0_i32_1 = arith.constant 0 : i32
    return %arg0, %arg1, %c0_i32, %c0_i32_0 : i32, i32, i32, i32
  }
}

</mosaic_0001>

<bundles_post_ra>
// kernel: tpu_custom_call.1
= control target key start
LH: loop header
LB: loop body
LE: loop exit
PB: predicated region body
PF: predicated region fallthrough
CT: control target
= control target key end

     0   :  { %11 = vsyncpa [#allocation3], 0  ;;  %s1410_s0 = inlined_call_operand.vmem [shape: f32[2,4,256], index: 0, kind: input, shape index: {}]   ;;  %s1411_s1 = inlined_call_operand.vmem [shape: f32[2,4,256], index: 1, kind: input, shape index: {}]   ;;  %s1412_s2 = inlined_call_operand.vmem [shape: f32[4,24,1], index: 2, kind: input, shape index: {}]   ;;  %s1413_s3 = inlined_call_operand.vmem [shape: f32[24,1], index: 3, kind: input, shape index: {}]   ;;  %s1414_s4 = inlined_call_operand.hbm [shape: f32[2,1,8,128], index: 4, kind: output, shape index: {0}]   ;;  %s1415_s5 = inlined_call_operand.hbm [shape: f32[2,1,1,128], index: 5, kind: output, shape index: {1}]  }
   0x1   :  { %13 = vsyncpa [#allocation3 + $0x1], 0 }
   0x2   :  { %14 = vsyncpa [#allocation5], 0 }
   0x3   :  { %16 = vsyncpa [#allocation5 + $0x1], 0  ;;  %s1131_s18 = smov 0   ;;  %s1133_s19 = smov 0  }
   0x4   :  { %s1135_s20 = smov 0   ;;  %s1137_s21 = smov 0  }
   0x5   :  { %s1139_s22 = smov 0   ;;  %s1141_s23 = smov 0  }
   0x6 LB: > { %s867_s24 = sadd.s32 4294967295, %s1095_s23   ;;  %s868_s25 = sadd.s32 4294967294, %s1095_s23   ;;  %s1095_s23 = sphi %s1141_s23, %s22_s23   ;;  %s1091_s22 = sphi %s1139_s22, %s1422_s22   ;;  %s1087_s21 = sphi %s1137_s21, %s1421_s21   ;;  %s1083_s20 = sphi %s1135_s20, %s1420_s20   ;;  %s1079_s19 = sphi %s1133_s19, %s1419_s19   ;;  %s1075_s18 = sphi %s1131_s18, %s1418_s18  }
   0x7   : > { %s34_s26 = sadd.s32 1, %s1091_s22  ;;  %s141_s27 = sadd.s32 1, %s1083_s20 }
   0x8   : > { %p36_p0 = scmp.ge.s32.totalorder %s34_s26, 2  ;;  %p151_p1 = scmp.ne.s32.totalorder %s1083_s20, %s1079_s19 }
   0x9   : > { %p152_p2 = scmp.eq.s32.totalorder %s867_s24, 1  ;;  %p157_p3 = scmp.ne.s32.totalorder %s1079_s19, %s1075_s18 }
   0xa   : > { %s1424_s26 = smov (%p36_p0, %s34_s26), 0  ;;  %p158_p5 = scmp.eq.s32.totalorder %s868_s25, 1 }
   0xb   : > { %p1171_p4 = por %p152_p2, %p151_p1  ;;  %s136_s29 = ssub.s32 %s1091_s22, %s1424_s26 }
   0xc   : > { %p871_p6 = scmp.ge.s32.totalorder %s1095_s23, 1  ;;  %p139_p7 = scmp.eq.s32.totalorder %s136_s29, 0 }
   0xd   : > { %p1178_p8 = por %p158_p5, %p157_p3  ;;  %p236_p9 = scmp.lt.s32.totalorder %s1095_s23, 3 }
   0xe   : > { %s1184_s6 = scalar_select %p139_p7, %s1083_s20, %s141_s27  }
   0xf   : > { %p237_p10 = pnand %p871_p6, %p236_p9 }
  0x10   : > { %v305_v0 = vld [vmem:[%s1412_s2 + $0x8] sm:$0xff] (!%p237_p10)  ;;  %v304_v1 = vld [vmem:[%s1412_s2] sm:$0xff] (!%p237_p10)  ;;  %v1097_v2 = vmov (!%p237_p10), 0   ;;  %v877_v4 = vld [vmem:[%s1412_s2 + $0x18] sm:$0xff] (!%p237_p10)  ;;  %p282_p11 = scmp.lt.s32.totalorder (!%p237_p10), %s1087_s21, 1  ;;  %v336_v16 = vlaneseq (!%p237_p10)  ;;  %s1320_s15 = sand.u32 (!%p237_p10), 1, %s1079_s19  }
  0x11   : > { %240 = sbr.rel (%p237_p10) target bundleno = 237 (0xed), region = 36  ;;  %960 = vset.pattern.permute.xlu1 (!%p237_p10), %v1097_v2  ;;  %959 = vset.pattern.permute.xlu0 (!%p237_p10), %v1097_v2  ;;  %v878_v3 = vld [vmem:[%s1412_s2 + $0x20] sm:$0xff] (!%p237_p10)  ;;  %v881_v5 = vld [vmem:[%s1412_s2 + $0x38] sm:$0xff] (!%p237_p10)  ;;  %v880_v6 = vld [vmem:[%s1412_s2 + $0x30] sm:$0xff] (!%p237_p10)  ;;  %s872_s16 = sshll.u32 (!%p237_p10), %s1320_s15, 3 }
  0x12   : > { %327 = vperm.xlu1 (!%p237_p10), %960, %v305_v0   ;;  %322 = vperm.xlu0 (!%p237_p10), %959, %v304_v1   ;;  %v306_v7 = vld [vmem:[%s1412_s2 + $0x10] sm:$0xff] (!%p237_p10)  ;;  %v883_v8 = vld [vmem:[%s1412_s2 + $0x48] sm:$0xff] (!%p237_p10)  ;;  %v882_v11 = vld [vmem:[%s1412_s2 + $0x40] sm:$0xff] (!%p237_p10)  ;;  %v337_v17 = vshrl.u32 (!%p237_p10), %v336_v16, 7  ;;  %s892_s17 = sshll.u32 (!%p237_p10), %s1087_s21, 4  ;;  %s280_s24 = scalar_lea.vmem (!%p237_p10), [#allocation4], %s1320_s15 }
  0x13   : > { %v884_v9 = vld [vmem:[%s1412_s2 + $0x50] sm:$0xff] (!%p237_p10)  ;;  %v879_v10 = vld [vmem:[%s1412_s2 + $0x28] sm:$0xff] (!%p237_p10)  ;;  %v301_v12 = vld [vmem:[%s1413_s3] sm:$0xff] (!%p237_p10)  ;;  %s746_s25 = sshll.u32 (!%p237_p10), %s280_s24, 4  ;;  %s891_s27 = sshll.u32 (!%p237_p10), %s1087_s21, 7  ;;  %s1334_s25 = int_to_ptr.vmem [resolvable:$true] %s746_s25 }
  0x14   : > { %v885_v13 = vld [vmem:[%s1412_s2 + $0x58] sm:$0xff] (!%p237_p10)  ;;  %v302_v14 = vld [vmem:[%s1413_s3 + $0x8] sm:$0xff] (!%p237_p10)  ;;  %v303_v15 = vld [vmem:[%s1413_s3 + $0x10] sm:$0xff] (!%p237_p10)  ;;  %v338_v18 = vsub.s32 (!%p237_p10), 0, %v337_v17  ;;  %v342_v19 = vsub.s32 (!%p237_p10), 4, %v337_v17  ;;  %v377_v21 = vsub.s32 (!%p237_p10), 1, %v337_v17  ;;  %s1332_s10 = scalar_lea.hbm (!%p237_p10), %s1415_s5, %s892_s17  ;;  %s1339_s12 = scalar_lea.hbm (!%p237_p10), %s1414_s4, %s891_s27 }
  0x15   : > { %v381_v23 = vsub.s32 (!%p237_p10), 5, %v337_v17  ;;  %v422_v24 = vsub.s32 (!%p237_p10), 2, %v337_v17  ;;  %v426_v25 = vsub.s32 (!%p237_p10), 6, %v337_v17  ;;  %v467_v26 = vsub.s32 (!%p237_p10), 3, %v337_v17  ;;  %s1326_s29 = scalar_lea.vmem (!%p237_p10), [#allocation2], %s872_s16  ;;  %s719_s13 = scalar_lea.sflag (!%p237_p10), [#allocation5], %s1320_s15 }
  0x16   : > { %367 = vperm.xlu1 (!%p237_p10), %960, %v878_v3   ;;  %362 = vperm.xlu0 (!%p237_p10), %959, %v877_v4   ;;  %v471_v28 = vsub.s32 (!%p237_p10), 7, %v337_v17  ;;  %s1099_s16 = smov (!%p237_p10), [#allocation4]  }
  0x17   : > { %s989_s17 = sshll.u32 (!%p237_p10), %s1099_s16, 4  ;;  %s990_s17 = int_to_ptr.vmem [resolvable:$false] %s989_s17 }
  0x18   : > { %s283_s7 = scalar_select %p282_p11, %s1087_s21, 1 }
  0x19   : > { %p992_p1 = scmp.lt.s32.totalorder %s1334_s25, %s990_s17 }
  0x1a   : > { %412 = vperm.xlu1 %960, %v881_v5   ;;  %407 = vperm.xlu0 %959, %v880_v6   ;;  %s895_s8 = sshll.u32 %s283_s7, 3  ;;  %s732_s7 = sshll.u32 %s1326_s29, 4  ;;  %s1341_s7 = int_to_ptr.vmem [resolvable:$true] %s732_s7 }
  0x1b   : > { %s289_s11 = scalar_lea.vmem %s1410_s0, %s895_s8  ;;  %s299_s14 = scalar_lea.vmem %s1411_s1, %s895_s8 }
  0x1c   : > { %v319_v20 = vld [vmem:[%s289_s11] sm:$0xff]  ;;  %s991_s8 = scalar_lea.vmem %s990_s17, 32 }
  0x1d   : > { %v534_v22 = vld [vmem:[%s299_s14] sm:$0xff]  ;;  %v339_v27 = vrot.slane %v319_v20, %v338_v18  ;;  %v343_v29 = vrot.slane %v319_v20, %v342_v19  ;;  %v378_v32 = vrot.slane %v319_v20, %v377_v21  ;;  %v382_v33 = vrot.slane %v319_v20, %v381_v23  ;;  %s985_s14 = scalar_lea.vmem %s1334_s25, 16 }
  0x1e   : > { %332 = vperm.xlu1 %960, %v306_v7   ;;  %452 = vperm.xlu0 %959, %v883_v8   ;;  %v539_v30 = vrot.slane %v534_v22, %v338_v18  ;;  %v543_v31 = vrot.slane %v534_v22, %v342_v19  ;;  %v563_v34 = vrot.slane %v534_v22, %v377_v21  ;;  %p986_p12 = scmp.ne.s32.totalorder %s1334_s25, %s985_s14  ;;  %p993_p2 = scmp.lt.s32.totalorder %s991_s8, %s985_s14 }
  0x1f   : > { %v567_v35 = vrot.slane %v534_v22, %v381_v23  ;;  %v423_v36 = vrot.slane %v319_v20, %v422_v24  ;;  %v427_v37 = vrot.slane %v319_v20, %v426_v25  ;;  %v593_v38 = vrot.slane %v534_v22, %v422_v24 }
  0x20   : > { %v597_v39 = vrot.slane %v534_v22, %v426_v25  ;;  %v468_v40 = vrot.slane %v319_v20, %v467_v26  ;;  %v1239_v42 = vrot.slane %v339_v27, %v338_v18  ;;  %v472_v44 = vrot.slane %v319_v20, %v471_v28  ;;  %p987_p13 = pnand %p986_p12, %p1171_p4  ;;  %p994_p3 = por %p993_p2, %p992_p1 }
  0x21   : > { %v623_v45 = vrot.slane %v534_v22, %v467_v26  ;;  %v627_v46 = vrot.slane %v534_v22, %v471_v28  ;;  %v1241_v47 = vrot.slane %v343_v29, %v338_v18  ;;  %v1243_v48 = vrot.slane %v539_v30, %v338_v18 }
  0x22   : > { %457 = vperm.xlu1 %960, %v884_v9   ;;  %372 = vperm.xlu0 %959, %v879_v10   ;;  %v1245_v49 = vrot.slane %v543_v31, %v338_v18  ;;  %v1247_v50 = vrot.slane %v378_v32, %v377_v21  ;;  %v1249_v51 = vrot.slane %v382_v33, %v377_v21  ;;  %p988_p0 = pneg %p987_p13 }
  0x23   : > { %v1251_v52 = vrot.slane %v563_v34, %v377_v21  ;;  %v1253_v53 = vrot.slane %v567_v35, %v377_v21  ;;  %v1255_v54 = vrot.slane %v423_v36, %v422_v24  ;;  %v1257_v55 = vrot.slane %v427_v37, %v422_v24 }
  0x24   : > { %v1259_v56 = vrot.slane %v593_v38, %v422_v24  ;;  %v1261_v57 = vrot.slane %v597_v39, %v422_v24  ;;  %v1263_v58 = vrot.slane %v468_v40, %v467_v26  ;;  %v1266_v62 = vrot.slane %v472_v44, %v467_v26  ;;  %p995_p5 = pnand %p994_p3, %p988_p0 }
  0x25   : > { %v1268_v63 = vrot.slane %v623_v45, %v467_v26  ;;  %v1270_v0 = vrot.slane %v627_v46, %v467_v26 }
  0x26   : > { %417 = vperm.xlu0 %959, %v882_v11   ;;  %497 = vperm.xlu1 %960, %v301_v12  }
  0x2a   : > { %462 = vperm.xlu0 %959, %v885_v13   ;;  %502 = vperm.xlu1 %960, %v302_v14  }
  0x2e   : > { %507 = vperm.xlu0 %959, %v303_v15  }
  0x91   : > { %v328_v41 = vpop.permute.xlu1 %327  ;;  %v323_v43 = vpop.permute.xlu0 %322 }
  0x92   : > { %v356_v59 = vmul.f32 %v1239_v42, %v328_v41  ;;  %v357_v1 = vmul.f32 %v1241_v47, %v328_v41  ;;  %v556_v2 = vmul.f32 %v1243_v48, %v328_v41  ;;  %v557_v3 = vmul.f32 %v1245_v49, %v328_v41 }
  0x93   : > { %v354_v5 = vmul.f32 %v1239_v42, %v323_v43  ;;  %v355_v6 = vmul.f32 %v1241_v47, %v323_v43  ;;  %v554_v9 = vmul.f32 %v1243_v48, %v323_v43  ;;  %v555_v10 = vmul.f32 %v1245_v49, %v323_v43 }
  0x95   : > { %v368_v60 = vpop.permute.xlu1 %367  ;;  %v363_v61 = vpop.permute.xlu0 %362 }
  0x96   : > { %v395_v4 = vmul.f32 %v1247_v50, %v368_v60  ;;  %v396_v7 = vmul.f32 %v1249_v51, %v368_v60  ;;  %v580_v8 = vmul.f32 %v1251_v52, %v368_v60  ;;  %v581_v11 = vmul.f32 %v1253_v53, %v368_v60 }
  0x97   : > { %v393_v12 = vmul.f32 %v1247_v50, %v363_v61  ;;  %v394_v14 = vmul.f32 %v1249_v51, %v363_v61  ;;  %v578_v15 = vmul.f32 %v1251_v52, %v363_v61  ;;  %v579_v16 = vmul.f32 %v1253_v53, %v363_v61 }
  0x98   : > { %v401_v13 = vadd.f32 %v395_v4, %v356_v59  ;;  %v402_v23 = vadd.f32 %v396_v7, %v357_v1  ;;  %v586_v24 = vadd.f32 %v580_v8, %v556_v2  ;;  %v587_v27 = vadd.f32 %v581_v11, %v557_v3 }
  0x99   : > { %v413_v17 = vpop.permute.xlu1 %412  ;;  %v408_v18 = vpop.permute.xlu0 %407  ;;  %v399_v28 = vadd.f32 %v393_v12, %v354_v5  ;;  %v400_v31 = vadd.f32 %v394_v14, %v355_v6  ;;  %v584_v32 = vadd.f32 %v578_v15, %v554_v9  ;;  %v585_v33 = vadd.f32 %v579_v16, %v555_v10 }
  0x9a   : > { %v440_v19 = vmul.f32 %v1255_v54, %v413_v17  ;;  %v441_v20 = vmul.f32 %v1257_v55, %v413_v17  ;;  %v610_v21 = vmul.f32 %v1259_v56, %v413_v17  ;;  %v611_v22 = vmul.f32 %v1261_v57, %v413_v17 }
  0x9b   : > { %v438_v25 = vmul.f32 %v1255_v54, %v408_v18  ;;  %v439_v26 = vmul.f32 %v1257_v55, %v408_v18  ;;  %v608_v29 = vmul.f32 %v1259_v56, %v408_v18  ;;  %v609_v30 = vmul.f32 %v1261_v57, %v408_v18 }
  0x9c   : > { %v446_v36 = vadd.f32 %v440_v19, %v401_v13  ;;  %v447_v38 = vadd.f32 %v441_v20, %v402_v23  ;;  %v616_v39 = vadd.f32 %v610_v21, %v586_v24  ;;  %v617_v40 = vadd.f32 %v611_v22, %v587_v27 }
  0x9d   : > { %v333_v34 = vpop.permute.xlu1 %332  ;;  %v453_v35 = vpop.permute.xlu0 %452  ;;  %v444_v37 = vadd.f32 %v438_v25, %v399_v28  ;;  %v445_v41 = vadd.f32 %v439_v26, %v400_v31  ;;  %v614_v46 = vadd.f32 %v608_v29, %v584_v32  ;;  %v615_v59 = vadd.f32 %v609_v30, %v585_v33 }
  0x9e   : > { %v483_v43 = vmul.f32 %v1263_v58, %v453_v35  ;;  %v484_v44 = vmul.f32 %v1266_v62, %v453_v35  ;;  %v638_v45 = vmul.f32 %v1268_v63, %v453_v35  ;;  %v358_v60 = vmul.f32 %v1239_v42, %v333_v34 }
  0x9f   : > { %v639_v61 = vmul.f32 %v1270_v0, %v453_v35  ;;  %v359_v1 = vmul.f32 %v1241_v47, %v333_v34  ;;  %v558_v2 = vmul.f32 %v1243_v48, %v333_v34  ;;  %v559_v3 = vmul.f32 %v1245_v49, %v333_v34 }
  0xa0   : > { %v489_v6 = vadd.f32 %v483_v43, %v444_v37  ;;  %v490_v9 = vadd.f32 %v484_v44, %v445_v41  ;;  %v644_v10 = vadd.f32 %v638_v45, %v614_v46 }
  0xa1   : > { %v458_v4 = vpop.permute.xlu1 %457  ;;  %v373_v5 = vpop.permute.xlu0 %372  ;;  %v645_v13 = vadd.f32 %v639_v61, %v615_v59 }
  0xa2   : > { %v485_v7 = vmul.f32 %v1263_v58, %v458_v4  ;;  %v486_v8 = vmul.f32 %v1266_v62, %v458_v4  ;;  %v397_v11 = vmul.f32 %v1247_v50, %v373_v5  ;;  %v398_v42 = vmul.f32 %v1249_v51, %v373_v5 }
  0xa3   : > { %v582_v12 = vmul.f32 %v1251_v52, %v373_v5  ;;  %v583_v47 = vmul.f32 %v1253_v53, %v373_v5  ;;  %v640_v48 = vmul.f32 %v1268_v63, %v458_v4  ;;  %v641_v49 = vmul.f32 %v1270_v0, %v458_v4 }
  0xa4   : > { %v491_v14 = vadd.f32 %v485_v7, %v446_v36  ;;  %v403_v15 = vadd.f32 %v397_v11, %v358_v60  ;;  %v404_v16 = vadd.f32 %v398_v42, %v359_v1  ;;  %v492_v20 = vadd.f32 %v486_v8, %v447_v38 }
  0xa5   : > { %v588_v17 = vadd.f32 %v582_v12, %v558_v2  ;;  %v418_v18 = vpop.permute.xlu0 %417  ;;  %v498_v19 = vpop.permute.xlu1 %497  ;;  %v589_v21 = vadd.f32 %v583_v47, %v559_v3  ;;  %v646_v26 = vadd.f32 %v640_v48, %v616_v39  ;;  %v647_v27 = vadd.f32 %v641_v49, %v617_v40 }
  0xa6   : > { %v442_v50 = vmul.f32 %v1255_v54, %v418_v18  ;;  %v443_v51 = vmul.f32 %v1257_v55, %v418_v18  ;;  %v612_v52 = vmul.f32 %v1259_v56, %v418_v18  ;;  %v613_v53 = vmul.f32 %v1261_v57, %v418_v18 }
  0xa7   : > { %v510_v22 = vadd.f32 %v498_v19, %v489_v6  ;;  %v511_v23 = vadd.f32 %v498_v19, %v490_v9  ;;  %v650_v24 = vadd.f32 %v644_v10, %v498_v19  ;;  %v651_v25 = vadd.f32 %v645_v13, %v498_v19 }
  0xa8   : > { %v448_v28 = vadd.f32 %v442_v50, %v403_v15  ;;  %v449_v31 = vadd.f32 %v443_v51, %v404_v16  ;;  %v618_v32 = vadd.f32 %v612_v52, %v588_v17  ;;  %v619_v54 = vadd.f32 %v613_v53, %v589_v21 }
  0xa9   : > { %961 = vtanh.f32 %v510_v22  ;;  %v463_v29 = vpop.permute.xlu0 %462  ;;  %v503_v30 = vpop.permute.xlu1 %502  ;;  %v1098_v42 = vmov 0.0  }
  0xaa   : > { %963 = vtanh.f32 %v511_v23  ;;  %v487_v55 = vmul.f32 %v1263_v58, %v463_v29  ;;  %v488_v56 = vmul.f32 %v1266_v62, %v463_v29  ;;  %v642_v57 = vmul.f32 %v1268_v63, %v463_v29 }
  0xab   : > { %965 = vtanh.f32 %v650_v24  ;;  %v643_v33 = vmul.f32 %v1270_v0, %v463_v29  ;;  %v512_v34 = vadd.f32 %v503_v30, %v491_v14  ;;  %v513_v35 = vadd.f32 %v503_v30, %v492_v20 }
  0xac   : > { %967 = vtanh.f32 %v651_v25  ;;  %v652_v36 = vadd.f32 %v646_v26, %v503_v30  ;;  %v653_v37 = vadd.f32 %v647_v27, %v503_v30  ;;  %v493_v38 = vadd.f32 %v487_v55, %v448_v28 }
  0xad   : > { %969 = vtanh.f32 %v512_v34  ;;  %v508_v39 = vpop.permute.xlu0 %507  ;;  %v494_v40 = vadd.f32 %v488_v56, %v449_v31  ;;  %v648_v41 = vadd.f32 %v642_v57, %v618_v32  ;;  %v649_v43 = vadd.f32 %v643_v33, %v619_v54 }
  0xae   : > { %971 = vtanh.f32 %v513_v35  ;;  %v514_v58 = vadd.f32 %v508_v39, %v493_v38 }
  0xaf   : > { %973 = vtanh.f32 %v652_v36  ;;  %v515_v62 = vadd.f32 %v508_v39, %v494_v40  ;;  %v654_v44 = vadd.f32 %v648_v41, %v508_v39  ;;  %v655_v63 = vadd.f32 %v649_v43, %v508_v39 }
  0xb0   : > { %975 = vtanh.f32 %v653_v37 }
  0xb1   : > { %977 = vtanh.f32 %v514_v58 }
  0xb2   : > { %979 = vtanh.f32 %v515_v62 }
  0xb3   : > { %v962_v0 = vpop.eup %961  ;;  %981 = vtanh.f32 %v654_v44 }
  0xb4   : > { %v964_v45 = vpop.eup %963  ;;  %v522_v46 = vadd.f32 1.0, %v962_v0  ;;  %983 = vtanh.f32 %v655_v63 }
  0xb5   : > { %v966_v59 = vpop.eup %965  ;;  %v523_v60 = vadd.f32 1.0, %v964_v45 }
  0xb6   : > { %v968_v61 = vpop.eup %967  ;;  %v528_v1 = vmul.f32 0.5, %v522_v46  ;;  %v662_v2 = vadd.f32 1.0, %v966_v59 }
  0xb7   : > { %v970_v3 = vpop.eup %969  ;;  %v529_v4 = vmul.f32 0.5, %v523_v60  ;;  %v663_v5 = vadd.f32 1.0, %v968_v61 }
  0xb8   : > { %v972_v6 = vpop.eup %971  ;;  %v668_v7 = vmul.f32 0.5, %v662_v2  ;;  %v524_v8 = vadd.f32 1.0, %v970_v3  ;;  %vm693_vm0 = vcmp.gt.f32.partialorder %v528_v1, 0.25 }
  0xb9   : > { %v974_v9 = vpop.eup %973  ;;  %v669_v10 = vmul.f32 0.5, %v663_v5  ;;  %v525_v11 = vadd.f32 1.0, %v972_v6  ;;  %vm694_vm1 = vcmp.gt.f32.partialorder %v529_v4, 0.25  ;;  %v886_v12 = vsel %vm693_vm0, 1.0, %v1098_v42 }
  0xba   : > { %v976_v47 = vpop.eup %975  ;;  %v674_v48 = vsub.f32 %v528_v1, %v668_v7  ;;  %v530_v49 = vmul.f32 0.5, %v524_v8  ;;  %v664_v13 = vadd.f32 1.0, %v974_v9  ;;  %v887_v14 = vsel %vm694_vm1, 1.0, %v1098_v42 }
  0xbb   : > { %v978_v15 = vpop.eup %977  ;;  %v677_v16 = vsub.f32 %v529_v4, %v669_v10  ;;  %v531_v17 = vmul.f32 0.5, %v525_v11  ;;  %v665_v18 = vadd.f32 1.0, %v976_v47  ;;  %vm699_vm2 = vcmp.gt.f32.partialorder %v668_v7, 0.25 }
  0xbc   : > { %v980_v19 = vpop.eup %979  ;;  %v675_v20 = vand.u32 2147483647, %v674_v48  ;;  %v670_v50 = vmul.f32 0.5, %v664_v13  ;;  %v526_v51 = vadd.f32 1.0, %v978_v15  ;;  %vm700_vm3 = vcmp.gt.f32.partialorder %v669_v10, 0.25 }
  0xbd   : > { %v982_v52 = vpop.eup %981  ;;  %v678_v53 = vand.u32 2147483647, %v677_v16  ;;  %v671_v21 = vmul.f32 0.5, %v665_v18  ;;  %v527_v22 = vadd.f32 1.0, %v980_v19  ;;  %v888_v23 = vsel %vm699_vm2, 1.0, %v1098_v42 }
  0xbe   : > { %v984_v24 = vpop.eup %983  ;;  %v680_v25 = vsub.f32 %v530_v49, %v670_v50  ;;  %v532_v26 = vmul.f32 0.5, %v526_v51  ;;  %v666_v27 = vadd.f32 1.0, %v982_v52  ;;  %v889_v28 = vsel %vm700_vm3, 1.0, %v1098_v42 }
  0xbf   : > { %v683_v29 = vsub.f32 %v531_v17, %v671_v21  ;;  %v533_v30 = vmul.f32 0.5, %v527_v22  ;;  %v667_v31 = vadd.f32 1.0, %v984_v24  ;;  %v679_v32 = vadd.f32 %v678_v53, %v675_v20 }
  0xc0   : > { %v681_v54 = vand.u32 2147483647, %v680_v25  ;;  %v672_v55 = vmul.f32 0.5, %v666_v27  ;;  %v705_v56 = vsub.f32 %v886_v12, %v888_v23  ;;  %v706_v57 = vsub.f32 %v887_v14, %v889_v28 }
  0xc1   : > { %v684_v33 = vand.u32 2147483647, %v683_v29  ;;  %v673_v34 = vmul.f32 0.5, %v667_v31 }
  0xc2   : > { %v686_v35 = vsub.f32 %v532_v26, %v672_v55  ;;  %v682_v36 = vadd.f32 %v681_v54, %v679_v32  ;;  %v707_v37 = vand.u32 2147483647, %v705_v56  ;;  %v708_v38 = vand.u32 2147483647, %v706_v57 }
  0xc3   : > { %v689_v39 = vsub.f32 %v533_v30, %v673_v34 }
  0xc4   : > { %v685_v40 = vadd.f32 %v684_v33, %v682_v36  ;;  %v687_v41 = vand.u32 2147483647, %v686_v35  ;;  %v709_v43 = vsub.f32 1.0, %v707_v37  ;;  %v710_v58 = vsub.f32 1.0, %v708_v38 }
  0xc5   : > { %v690_v44 = vand.u32 2147483647, %v689_v39 }
  0xc6   : > { %v688_v62 = vadd.f32 %v687_v41, %v685_v40  ;;  %v711_v63 = vadd.f32 %v710_v58, %v709_v43 }
  0xc8   : > { %v691_v0 = vadd.f32 %v690_v44, %v688_v62  ;;  %712 = vst [vmem:[%s280_s24 - $0x4] sm:$0x10] %v711_v63 }
  0xc9   : > { %998 = shalt.err (!%p995_p5)
}
  0xca   : > { %s999_s24 = scalar_lea.hbm %s1332_s10, 16  ;;  %s1003_s21 = scalar_lea.hbm %s1415_s5, 32 }
  0xcb   : > { %p1000_p6 = scmp.ne.s32.totalorder %s1332_s10, %s999_s24  ;;  %p1004_p10 = scmp.lt.u32.totalorder %s1332_s10, %s1415_s5 }
  0xcc   : > { %p1005_p11 = scmp.lt.u32.totalorder %s1003_s21, %s999_s24  ;;  %p1007_p13 = scmp.lt.u32.totalorder %s999_s24, %s1332_s10 }
  0xcd   : > { %p1001_p7 = pnand %p1000_p6, %p1171_p4 }
  0xce   : > { %p1006_p12 = por %p1005_p11, %p1004_p10 }
  0xcf   : > { %p1002_p9 = pneg %p1001_p7 }
  0xd0   : > { %p1008_p0 = por %p1007_p13, %p1006_p12 }
  0xd2   : > { %p1009_p1 = pnand %p1008_p0, %p1002_p9 }
  0xd4   : > { %1012 = shalt.err (!%p1009_p1)
}
  0xd5   : > { %898 = dma.vmem_to_hbm [thread:$0]  (%p1171_p4), %s1334_s25, 16, %s1332_s10, %s719_s13   ;;  %692 = vst [vmem:[%s1326_s29] sm:$0xff] %v691_v0 }
  0xd6   : > { %s714_s14 = scalar_lea.sflag [#allocation3], %s1320_s15  ;;  %s1013_s17 = scalar_lea.vmem %s1341_s7, 128 }
  0xd7   : > { %p1014_p2 = scmp.ne.s32.totalorder %s1341_s7, %s1013_s17  ;;  %s1100_s8 = smov [#allocation2]  }
  0xd8   : > { %s1017_s24 = sshll.u32 %s1100_s8, 4  ;;  %s1018_s24 = int_to_ptr.vmem [resolvable:$false] %s1017_s24 }
  0xd9   : > { %p1015_p3 = pnand %p1014_p2, %p1171_p4  ;;  %s1019_s27 = scalar_lea.vmem %s1018_s24, 256 }
  0xda   : > { %p1020_p6 = scmp.lt.s32.totalorder %s1341_s7, %s1018_s24  ;;  %p1021_p7 = scmp.lt.s32.totalorder %s1019_s27, %s1013_s17 }
  0xdb   : > { %p1016_p5 = pneg %p1015_p3 }
  0xdc   : > { %p1022_p9 = por %p1021_p7, %p1020_p6 }
  0xde   : > { %p1023_p10 = pnand %p1022_p9, %p1016_p5 }
  0xe0   : > { %1026 = shalt.err (!%p1023_p10)
}
  0xe1   : > { %s1027_s15 = scalar_lea.hbm %s1339_s12, 128  ;;  %s1031_s10 = scalar_lea.hbm %s1414_s4, 256 }
  0xe2   : > { %p1028_p11 = scmp.ne.s32.totalorder %s1339_s12, %s1027_s15  ;;  %p1032_p0 = scmp.lt.u32.totalorder %s1339_s12, %s1414_s4 }
  0xe3   : > { %p1033_p1 = scmp.lt.u32.totalorder %s1031_s10, %s1027_s15  ;;  %p1035_p3 = scmp.lt.u32.totalorder %s1027_s15, %s1339_s12 }
  0xe4   : > { %p1029_p12 = pnand %p1028_p11, %p1171_p4 }
  0xe5   : > { %p1034_p2 = por %p1033_p1, %p1032_p0 }
  0xe6   : > { %p1030_p13 = pneg %p1029_p12 }
  0xe7   : > { %p1036_p5 = por %p1035_p3, %p1034_p2 }
  0xe9   : > { %p1037_p6 = pnand %p1036_p5, %p1030_p13 }
  0xeb   : > { %1040 = shalt.err (!%p1037_p6)
}
  0xec   : > { %897 = dma.vmem_to_hbm [thread:$0]  (%p1171_p4), %s1341_s7, 128, %s1339_s12, %s714_s14  }
  0xed PF: > { %p908_p7 = scmp.ge.s32.totalorder %s1095_s23, 2  ;;  %s758_s21 = sand.u32 1, %s1075_s18  }
  0xee   : > { %s759_s11 = scalar_lea.sflag [#allocation3], %s758_s21 }
  0xef   : > { %p902_p9 = pnand %p908_p7, %p1178_p8 }
  0xf1   : > { %1066 = dma.done.wait (!%p902_p9), %s759_s11, 128  }
  0xf2   : > { %1068 = vsyncadd (!%p902_p9), %s759_s11, 4294967168  ;;  %s768_s16 = scalar_lea.sflag [#allocation5], %s758_s21 }
  0xf3   : > { %1070 = dma.done.wait (!%p902_p9), %s768_s16, 16  }
  0xf4   : > { %1072 = vsyncadd (!%p902_p9), %s768_s16, 4294967280  ;;  %s22_s23 = sadd.s32 1, %s1095_s23   ;;  %s1418_s18 = smov %s1079_s19 }
  0xf5   : > { %p19_p10 = scmp.ge.s32.totalorder %s22_s23, 4   ;;  %s1419_s19 = smov %s1083_s20 }
  0xf6   : > { %s1420_s20 = smov %s1184_s6  ;;  %s1421_s21 = smov %s1091_s22 }
  0xf7   : > { %s1422_s22 = smov %s1424_s26  ;;  %21 = sbr.rel (!%p19_p10) target bundleno = 6 (0x6), region = 94 }
  0xfe   :  { %772 = vsyncpa [#allocation3], 1 }
  0xff   :  { %774 = vsyncpa [#allocation3 + $0x1], 1 }
 0x100   :  { %775 = vsyncpa [#allocation5], 1 }
 0x101   :  { %777 = vsyncpa [#allocation5 + $0x1], 1 }

</bundles_post_ra>
